<compile_context>
chip_gen: v7x
topology: tpu7x:2x2x1
jax: 0.10.0
libtpu: 0.0.40
codegen_flags: <defaults>
</compile_context>

<pallas_src>
import functools

import jax
import jax.numpy as jnp
from jax.experimental import pallas as pl
from jax.experimental.pallas import tpu as pltpu


def _round_up(a, b):
    return (a + b - 1) // b * b


def _shiftmean_kernel(m_ref, s_ref, x_ref, o_ref, *, mode, tb):
    # Rows are (b, t, c)-ordered with C == 2, so channel == global_row % 2.
    # Build the per-row stat column once per tile from SMEM scalars: no
    # broadcast-row inputs, no HBM-materialized jnp.repeat arrays.
    row0 = pl.program_id(0) * tb
    ch = (row0 + jax.lax.broadcasted_iota(jnp.int32, (tb, 1), 0)) % 2
    is_c0 = ch == 0
    m = jnp.where(is_c0, m_ref[0], m_ref[1]).astype(o_ref.dtype)
    s = jnp.where(is_c0, s_ref[0], s_ref[1]).astype(o_ref.dtype)

    x = x_ref[...]
    if mode == "sub":
        # s holds 1/std -> one sub + one mul per vreg (no divide on hot path).
        o_ref[...] = (x - m) * s
    else:  # mode == "add"
        o_ref[...] = x * s + m


def shift_mean(x, mean, std, mode, *, target_block_bytes=4 << 20,
               donate_x=False):
    """Pallas equivalent of ShiftMean.forward(x, mode).

    x:    (B, T, 2, H, W)
    mean: (2,)
    std:  (2,)
    mode: 'sub' or 'add' (static)
    """
    if mode not in ("sub", "add"):
        raise NotImplementedError(mode)

    B, T, C, H, W = x.shape
    if C != 2:
        raise ValueError("ShiftMean is defined for a channel axis of size 2.")
    assert mean.shape == (C,) and std.shape == (C,)

    dtype = x.dtype
    itemsize = jnp.dtype(dtype).itemsize
    # dtype-aware sublane multiple: 8 for 4-byte, 16 for 2-byte, 32 for 1-byte.
    sub_mult = {1: 32, 2: 16, 4: 8}.get(itemsize, 8)

    N = B * T * C          # row axis (channel folded into rows)
    L = H * W              # lane axis (one spatial image per row)

    x2 = x.reshape(N, L)

    # Lane-align so every store is an unmasked, lane-dense vst.  Only pads
    # when H*W is not a multiple of 128.
    L_pad = _round_up(L, 128)
    if L_pad != L:
        x2 = jnp.pad(x2, ((0, 0), (0, L_pad - L)))

    mean_v = mean.astype(jnp.float32)
    if mode == "sub":
        scale_v = (1.0 / std).astype(jnp.float32)
    else:
        scale_v = std.astype(jnp.float32)

    # ---- Block sizing: bounded by bytes on BOTH axes -----------------------
    target_elems = max(1, target_block_bytes // itemsize)

    if L_pad * sub_mult <= target_elems:
        # Whole rows fit in the byte budget -> take full rows, tile rows only.
        tl = L_pad
        rows = max(sub_mult, (target_elems // L_pad) // sub_mult * sub_mult)
        tb = N if rows >= N else rows
    else:
        # One sublane-group of full rows already exceeds the budget -> tile
        # the lane axis too so a multi-MiB row cannot blow VMEM.
        tb = N if N <= sub_mult else sub_mult
        tl = max(128, min(L_pad, (target_elems // max(tb, 1)) // 128 * 128))

    n_row = pl.cdiv(N, tb)
    n_lane = pl.cdiv(L_pad, tl)

    # v7x megacore: make sure there is more than one grid step to shard
    # across the two TensorCores whenever the row axis allows it.
    if n_row * n_lane < 2 and N > sub_mult:
        tb = _round_up(pl.cdiv(N, 2), sub_mult)
        n_row = pl.cdiv(N, tb)

    grid = (n_row, n_lane)
    kernel = functools.partial(_shiftmean_kernel, mode=mode, tb=tb)

    # Optional in-place update (inputs: 0=mean, 1=scale, 2=x -> output 0).
    io_aliases = {2: 0} if donate_x else {}

    out = pl.pallas_call(
        kernel,
        out_shape=jax.ShapeDtypeStruct((N, L_pad), dtype),
        grid_spec=pltpu.PrefetchScalarGridSpec(
            num_scalar_prefetch=2,      # mean, scale -> SMEM scalars
            grid=grid,
            in_specs=[
                pl.BlockSpec((tb, tl), lambda i, j, m, s: (i, j)),
            ],
            out_specs=pl.BlockSpec((tb, tl), lambda i, j, m, s: (i, j)),
        ),
        compiler_params=pltpu.CompilerParams(
            dimension_semantics=("parallel", "parallel"),
            # 2x(in) + 2x(out) double-buffered 4 MiB blocks ~= 16 MiB; 32 MiB
            # scoped limit is within physical VMEM on v5e/v6e/v7x.
            vmem_limit_bytes=32 * 1024 * 1024,
        ),
        input_output_aliases=io_aliases,
    )(mean_v, scale_v, x2)

    if L_pad != L:
        out = out[:, :L]
    return out.reshape(B, T, C, H, W)


if __name__ == "__main__":
    key = jax.random.PRNGKey(0)
    k1, k2 = jax.random.split(key)

    # Deterministic "dataset statistics" (the module's __init__ args).
    mean = jnp.array([0.5, -0.25], dtype=jnp.float32)
    std = jnp.array([2.0, 0.5], dtype=jnp.float32)

    # Case 1: lane-aligned spatial size (H*W % 128 == 0).
    B, T, C, H, W = 2, 3, 2, 16, 16
    x = jax.random.normal(k1, (B, T, C, H, W), dtype=jnp.float32)

    y_sub = jax.block_until_ready(shift_mean(x, mean, std, "sub"))
    ref_sub = (x - mean.reshape(1, 1, C, 1, 1)) / std.reshape(1, 1, C, 1, 1)
    assert jnp.allclose(y_sub, ref_sub, atol=1e-6, rtol=1e-6)

    y_add = jax.block_until_ready(shift_mean(y_sub, mean, std, "add"))
    ref_add = y_sub * std.reshape(1, 1, C, 1, 1) + mean.reshape(1, 1, C, 1, 1)
    assert jnp.allclose(y_add, ref_add, atol=1e-6, rtol=1e-6)
    assert jnp.allclose(y_add, x, atol=1e-5, rtol=1e-5)

    # Case 2: non-128-aligned spatial size exercises the lane-padding path.
    B2, T2, H2, W2 = 1, 2, 10, 10
    x_small = jax.random.normal(k2, (B2, T2, C, H2, W2), dtype=jnp.float32)
    y2 = jax.block_until_ready(shift_mean(x_small, mean, std, "sub"))
    ref2 = (x_small - mean.reshape(1, 1, C, 1, 1)) / std.reshape(1, 1, C, 1, 1)
    assert jnp.allclose(y2, ref2, atol=1e-6, rtol=1e-6)

    print("KERNEL_OK")
</pallas_src>

<mosaic_0001>
module attributes {stable_mosaic.version = 11 : i64} {
  func.func @_shiftmean_kernel(%arg0: i32, %arg1: i32, %arg2: memref<2xf32, #tpu.memory_space<smem>>, %arg3: memref<2xf32, #tpu.memory_space<smem>>, %arg4: memref<8x256xf32, #tpu.memory_space<vmem>>, %arg5: memref<8x256xf32, #tpu.memory_space<vmem>>) attributes {dimension_semantics = [#tpu.dimension_semantics<parallel>, #tpu.dimension_semantics<parallel>], iteration_bounds = array<i64: 2, 1>, scalar_prefetch = 2 : i64, scratch_operands = 0 : i64, tpu.core_type = #tpu.core_type<tc>, window_params = [{transform_indices = @transform_0, window_bounds = array<i64: 8, 256>}, {transform_indices = @transform_1, window_bounds = array<i64: 8, 256>}]} {
    %c8_i32 = arith.constant 8 : i32
    %0 = arith.muli %arg0, %c8_i32 : i32
    %1 = tpu.iota {dimensions = array<i32: 0>} : vector<8x1xi32>
    %2 = vector.broadcast %0 : i32 to vector<8x1xi32>
    %3 = arith.addi %2, %1 : vector<8x1xi32>
    %c2_i32 = arith.constant 2 : i32
    %c0_i32 = arith.constant 0 : i32
    %4 = arith.cmpi eq, %c2_i32, %c0_i32 : i32
    %c1_i32 = arith.constant 1 : i32
    %5 = arith.select %4, %c1_i32, %c2_i32 : i32
    %6 = vector.broadcast %5 : i32 to vector<8x1xi32>
    %7 = arith.remsi %3, %6 : vector<8x1xi32>
    %c0_i32_0 = arith.constant 0 : i32
    %8 = vector.broadcast %c0_i32_0 : i32 to vector<8x1xi32>
    %9 = arith.cmpi ne, %7, %8 : vector<8x1xi32>
    %c0_i32_1 = arith.constant 0 : i32
    %10 = vector.broadcast %c0_i32_1 : i32 to vector<8x1xi32>
    %11 = arith.cmpi slt, %7, %10 : vector<8x1xi32>
    %c0_i32_2 = arith.constant 0 : i32
    %12 = arith.cmpi slt, %5, %c0_i32_2 : i32
    %13 = vector.broadcast %12 : i1 to vector<8x1xi1>
    %14 = vector.broadcast %13 : vector<8x1xi1> to vector<8x1xi1>
    %15 = arith.xori %11, %14 : vector<8x1xi1>
    %16 = arith.andi %15, %9 : vector<8x1xi1>
    %17 = vector.broadcast %5 : i32 to vector<8x1xi32>
    %18 = arith.addi %7, %17 : vector<8x1xi32>
    %19 = arith.select %16, %18, %7 : vector<8x1xi1>, vector<8x1xi32>
    %c0_i32_3 = arith.constant 0 : i32
    %20 = vector.broadcast %c0_i32_3 : i32 to vector<8x1xi32>
    %21 = arith.cmpi eq, %19, %20 : vector<8x1xi32>
    %c0 = arith.constant 0 : index
    %22 = memref.load %arg2[%c0] : memref<2xf32, #tpu.memory_space<smem>>
    %c1 = arith.constant 1 : index
    %23 = memref.load %arg2[%c1] : memref<2xf32, #tpu.memory_space<smem>>
    %24 = vector.broadcast %22 : f32 to vector<8x1xf32>
    %25 = vector.broadcast %23 : f32 to vector<8x1xf32>
    %26 = arith.select %21, %24, %25 : vector<8x1xi1>, vector<8x1xf32>
    %c0_4 = arith.constant 0 : index
    %27 = memref.load %arg3[%c0_4] : memref<2xf32, #tpu.memory_space<smem>>
    %c1_5 = arith.constant 1 : index
    %28 = memref.load %arg3[%c1_5] : memref<2xf32, #tpu.memory_space<smem>>
    %29 = vector.broadcast %27 : f32 to vector<8x1xf32>
    %30 = vector.broadcast %28 : f32 to vector<8x1xf32>
    %31 = arith.select %21, %29, %30 : vector<8x1xi1>, vector<8x1xf32>
    %c0_6 = arith.constant 0 : index
    %c0_7 = arith.constant 0 : index
    %32 = vector.load %arg4[%c0_6, %c0_7] : memref<8x256xf32, #tpu.memory_space<vmem>>, vector<8x256xf32>
    %33 = vector.broadcast %26 : vector<8x1xf32> to vector<8x256xf32>
    %34 = arith.subf %32, %33 : vector<8x256xf32>
    %35 = vector.broadcast %31 : vector<8x1xf32> to vector<8x256xf32>
    %36 = arith.mulf %34, %35 : vector<8x256xf32>
    %c0_8 = arith.constant 0 : index
    %c0_9 = arith.constant 0 : index
    %37 = vector.load %arg5[%c0_8, %c0_9] : memref<8x256xf32, #tpu.memory_space<vmem>>, vector<8x256xf32>
    tpu.vector_store %arg5[%c0_8, %c0_9], %36 {strides = array<i32>} : memref<8x256xf32, #tpu.memory_space<vmem>>, vector<8x256xf32>,
    return
  }
  func.func @transform_0(%arg0: i32, %arg1: i32, %arg2: memref<2xf32, #tpu.memory_space<smem>>, %arg3: memref<2xf32, #tpu.memory_space<smem>>) -> (i32, i32) {
    %c0_i32 = arith.constant 0 : i32
    return %arg0, %arg1 : i32, i32
  }
  func.func @transform_1(%arg0: i32, %arg1: i32, %arg2: memref<2xf32, #tpu.memory_space<smem>>, %arg3: memref<2xf32, #tpu.memory_space<smem>>) -> (i32, i32) {
    %c0_i32 = arith.constant 0 : i32
    return %arg0, %arg1 : i32, i32
  }
}

</mosaic_0001>

<bundles_post_ra>
// kernel: tpu_custom_call.1
= control target key start
LH: loop header
LB: loop body
LE: loop exit
PB: predicated region body
PF: predicated region fallthrough
CT: control target
= control target key end

     0   :  { %s739_s0 = inlined_call_operand.hbm [shape: f32[2], index: 0, kind: input, shape index: {}]   ;;  %s740_s2 = inlined_call_operand.hbm [shape: f32[12,256], index: 2, kind: input, shape index: {}]   ;;  %s741_s3 = inlined_call_operand.hbm [shape: f32[12,256], index: 3, kind: output, shape index: {}]   ;;  %s742_s1 = inlined_call_operand.vmem [shape: f32[2], index: 1, kind: input, shape index: {}]  }
   0x1   :  { %s385_s14 = scalar_lea.hbm %s739_s0, 16 }
   0x2   :  { %p386_p0 = scmp.ne.s32.totalorder %s739_s0, %s385_s14  ;;  %p389_p1 = scmp.lt.u32.totalorder %s385_s14, %s739_s0 }
   0x4   :  { %p391_p2 = pnand %p389_p1, %p386_p0 }
   0x6   :  { %394 = shalt.err (!%p391_p2)  }
   0x7   :  { %s523_s19 = smov [#allocation3]   ;;  %s10_s24 = sshll.u32 %s742_s1, 4  ;;  %s11_s24 = int_to_ptr.vmem [resolvable:$true] %s10_s24 }
   0x8   :  { %9 = dma.hbm_to_smem %s739_s0, 16, %s523_s19, [#allocation2] }
   0x9   :  { %s395_s25 = scalar_lea.vmem %s11_s24, 16  ;;  %p400_p4 = scmp.lt.s32.totalorder %s11_s24, %s11_s24 }
   0xa   :  { %p396_p3 = scmp.ne.s32.totalorder %s11_s24, %s395_s25  ;;  %p401_p5 = scmp.lt.s32.totalorder %s395_s25, %s395_s25 }
   0xc   :  { %p402_p6 = por %p401_p5, %p400_p4 }
   0xe   :  { %p403_p7 = pnand %p402_p6, %p396_p3 }
  0x10   :  { %406 = shalt.err (!%p403_p7)  }
  0x11   :  { %s524_s26 = smov [#allocation4]  }
  0x12   :  { %13 = dma.vmem_to_smem %s11_s24, 16, %s524_s26, [#allocation2] }
  0x13   :  { %489 = dma.done.wait [#allocation2], 32 }
  0x14   :  { %490 = vsyncadd [#allocation2], 4294967264 }
  0x15   :  { %15 = sfence }
  0x16   :  { %16 = vsyncpa [#allocation6], 0 }
  0x17   :  { %18 = vsyncpa [#allocation6 + $0x1], 0 }
  0x18   :  { %19 = vsyncpa [#allocation7], 0 }
  0x19   :  { %21 = vsyncpa [#allocation7 + $0x1], 0  ;;  %s562_s0 = smov 0   ;;  %s564_s1 = smov 0  }
  0x1a   :  { %s566_s27 = smov 0   ;;  %s568_s28 = smov 0  }
  0x1b   :  { %s570_s29 = smov 0   ;;  %s572_s30 = smov 0  }
  0x1c LB: > { %s300_s4 = sadd.s32 4294967295, %s521_s30   ;;  %s301_s5 = sadd.s32 4294967294, %s521_s30   ;;  %s521_s30 = sphi %s572_s30, %s27_s30   ;;  %s517_s29 = sphi %s570_s29, %s758_s29   ;;  %s513_s28 = sphi %s568_s28, %s757_s28   ;;  %s509_s27 = sphi %s566_s27, %s756_s27   ;;  %s505_s1 = sphi %s564_s1, %s755_s1   ;;  %s501_s0 = sphi %s562_s0, %s754_s0  }
  0x1d   : > { %s39_s6 = sadd.s32 1, %s517_s29  ;;  %s48_s7 = sadd.s32 1, %s509_s27 }
  0x1e   : > { %p41_p8 = scmp.ge.s32.totalorder %s39_s6, 2  ;;  %p55_p9 = scmp.ne.s32.totalorder %s509_s27, %s505_s1 }
  0x1f   : > { %p56_p10 = scmp.eq.s32.totalorder %s521_s30, 0  ;;  %p61_p11 = scmp.ne.s32.totalorder %s505_s1, %s501_s0 }
  0x20   : > { %s760_s6 = smov (%p41_p8, %s39_s6), 0  ;;  %p62_p13 = scmp.eq.s32.totalorder %s300_s4, 0 }
  0x21   : > { %p603_p12 = por %p56_p10, %p55_p9  ;;  %s43_s9 = ssub.s32 %s517_s29, %s760_s6 }
  0x22   : > { %p87_p0 = scmp.eq.s32.totalorder %s300_s4, 1  ;;  %p46_p1 = scmp.eq.s32.totalorder %s43_s9, 0 }
  0x23   : > { %p609_p2 = por %p62_p13, %p61_p11  ;;  %p93_p4 = scmp.eq.s32.totalorder %s301_s5, 1 }
  0x24   : > { %p613_p3 = por %p87_p0, %p55_p9  ;;  %p333_p7 = scmp.lt.s32.totalorder %s521_s30, 2 }
  0x25   : > { %s618_s12 = scalar_select %p46_p1, %s509_s27, %s48_s7  }
  0x26   : > { %s746_s11 = scalar_select %p613_p3, 1, 0 }
  0x27   : > { %p620_p5 = por %p93_p4, %p61_p11  ;;  %s113_s14 = sand.u32 1, %s509_s27  }
  0x28   : > { %s304_s15 = sshll.u32 %s113_s14, 4  ;;  %s319_s16 = sshll.u32 %s517_s29, 8 }
  0x29   : > { %s747_s13 = scalar_select %p620_p5, 1, 0 }
  0x2a   : > { %s631_s19 = scalar_lea.hbm %s740_s2, %s319_s16  ;;  %s117_s20 = scalar_lea.vmem [#allocation5], %s304_s15 }
  0x2b   : > { %s127_s21 = sshll.u32 %s117_s20, 4  ;;  %p637_p8 = pnand %p333_p7, %p603_p12  ;;  %s633_s21 = int_to_ptr.vmem [resolvable:$true] %s127_s21 }
  0x2c   : > { %s114_s23 = scalar_lea.sflag [#allocation6], %s113_s14  ;;  %s407_s24 = scalar_lea.hbm %s631_s19, 256 }
  0x2d   : > { %p408_p11 = scmp.ne.s32.totalorder %s631_s19, %s407_s24  ;;  %p409_p13 = pneg %p637_p8 }
  0x2e   : > { %s412_s4 = scalar_lea.hbm %s740_s2, 512  ;;  %p413_p12 = scmp.lt.u32.totalorder %s631_s19, %s740_s2 }
  0x2f   : > { %p410_p0 = pnand %p409_p13, %p408_p11  ;;  %p414_p4 = scmp.lt.u32.totalorder %s412_s4, %s407_s24 }
  0x30   : > { %p416_p6 = scmp.lt.u32.totalorder %s407_s24, %s631_s19 }
  0x31   : > { %p411_p1 = pneg %p410_p0  ;;  %p415_p7 = por %p414_p4, %p413_p12 }
  0x33   : > { %p417_p9 = por %p416_p6, %p415_p7 }
  0x35   : > { %p418_p10 = pnand %p417_p9, %p411_p1 }
  0x37   : > { %421 = shalt.err (!%p418_p10)
}
  0x38   : > { %s422_s8 = scalar_lea.vmem %s633_s21, 256  ;;  %s525_s9 = smov [#allocation5]  }
  0x39   : > { %p423_p11 = scmp.ne.s32.totalorder %s633_s21, %s422_s8  ;;  %s427_s14 = sshll.u32 %s525_s9, 4  ;;  %s428_s14 = int_to_ptr.vmem [resolvable:$false] %s427_s14 }
  0x3a   : > { %s429_s15 = scalar_lea.vmem %s428_s14, 512  ;;  %p430_p3 = scmp.lt.s32.totalorder %s633_s21, %s428_s14 }
  0x3b   : > { %p425_p0 = pnand %p423_p11, %p409_p13  ;;  %p431_p12 = scmp.lt.s32.totalorder %s429_s15, %s422_s8 }
  0x3d   : > { %p426_p5 = pneg %p425_p0  ;;  %p432_p4 = por %p431_p12, %p430_p3 }
  0x3f   : > { %p433_p6 = pnand %p432_p4, %p426_p5 }
  0x41   : > { %436 = shalt.err (!%p433_p6)
}
  0x42   : > { %328 = dma.hbm_to_vmem [thread:$0]  (!%p637_p8), %s631_s19, 256, %s633_s21, %s114_s23  }
  0x43   : > { %p749_p9 = scmp.lt.s32.totalorder %s521_s30, 3  ;;  %p750_p10 = scmp.ge.s32.totalorder %s521_s30, 1 }
  0x45   : > { %p133_p13 = pnand %p750_p10, %p749_p9 }
  0x46   : > { %s673_s16 = sand.u32 (!%p133_p13), 1, %s505_s1  }
  0x47   : > { %136 = sbr.rel (%p133_p13) target bundleno = 117 (0x75), region = 24  ;;  %s308_s17 = sshll.u32 (!%p133_p13), %s673_s16, 4 }
  0x48   : > { %s139_s18 = scalar_lea.sflag (!%p133_p13), [#allocation6], %s673_s16  ;;  %s142_s20 = scalar_lea.vmem (!%p133_p13), [#allocation5], %s308_s17 }
  0x4e   : > { %492 = dma.done.wait (%p609_p2), %s139_s18, 256  }
  0x4f   : > { %494 = vsyncadd (%p609_p2), %s139_s18, 4294967040  ;;  %s310_s19 = sshll.u32 %s513_s28, 3  ;;  %v164_v0 = vlaneseq  ;;  %s181_s21 = sld [smem:[#allocation3]]  ;;  %v191_v15 = vld [vmem:[%s142_s20] sm:$0xff]  ;;  %v192_v16 = vld [vmem:[%s142_s20 + $0x8] sm:$0xff] }
  0x50   : > { %v166_v1 = vstv %s310_s19  ;;  %s312_s22 = sld [smem:[#allocation3 + $0x1]]  ;;  %s186_s23 = sld [smem:[#allocation4]] }
  0x51   : > { %v165_v2 = vshrl.u32 %v164_v0, 7  ;;  %s313_s24 = sld [smem:[#allocation4 + $0x1]]  ;;  %s160_s10 = scalar_lea.vmem [#allocation8], %s308_s17 }
  0x52   : > { %s216_s25 = sshll.u32 %s160_s10, 4  ;;  %s320_s26 = sshll.u32 %s513_s28, 8  ;;  %s687_s25 = int_to_ptr.vmem [resolvable:$true] %s216_s25 }
  0x53   : > { %v167_v3 = vadd.s32 %v166_v1, %v165_v2  ;;  %s692_s7 = scalar_lea.hbm %s741_s3, %s320_s26  ;;  %s200_s8 = scalar_lea.sflag [#allocation7], %s673_s16 }
  0x54   : > { %s437_s9 = scalar_lea.vmem %s687_s25, 256  ;;  %p751_p3 = scmp.ne.s32.totalorder %s746_s11, 0 }
  0x55   : > { %v169_v4 = vsub.s32 0, %v167_v3  ;;  %vm168_vm0 = vcmp.lt.s32.totalorder %v167_v3, 0  ;;  %v183_v10 = vstv %s181_s21  ;;  %p438_p2 = scmp.ne.s32.totalorder %s687_s25, %s437_s9  ;;  %s526_s28 = smov [#allocation8]  }
  0x56   : > { %v184_v11 = vstv %s312_s22  ;;  %v188_v12 = vstv %s186_s23  ;;  %s441_s14 = sshll.u32 %s526_s28, 4  ;;  %s442_s14 = int_to_ptr.vmem [resolvable:$false] %s441_s14 }
  0x57   : > { %v311_v5 = vmin.u32 %v169_v4, %v167_v3  ;;  %v189_v13 = vstv %s313_s24  ;;  %p439_p5 = pnand %p438_p2, %p751_p3  ;;  %s443_s15 = scalar_lea.vmem %s442_s14, 512 }
  0x58   : > { %p444_p1 = scmp.lt.s32.totalorder %s687_s25, %s442_s14  ;;  %p445_p7 = scmp.lt.s32.totalorder %s443_s15, %s437_s9 }
  0x59   : > { %v172_v6 = vand.u32 1, %v311_v5  ;;  %p440_p8 = pneg %p439_p5 }
  0x5a   : > { %p446_p11 = por %p445_p7, %p444_p1 }
  0x5b   : > { %v173_v7 = vsub.s32 0, %v172_v6 }
  0x5c   : > { %p447_p0 = pnand %p446_p11, %p440_p8 }
  0x5d   : > { %v174_v8 = vsel %vm168_vm0, %v173_v7, %v172_v6 }
  0x5e   : > { %vm175_vm1 = vcmp.ne.s32.totalorder %v174_v8, 0  ;;  %vm176_vm2 = vcmp.lt.s32.totalorder %v174_v8, 0  ;;  %v178_v9 = vadd.s32 2, %v174_v8 }
  0x5f   : > { %vm177_vm3 = vmand %vm176_vm2, %vm175_vm1 }
  0x60   : > { %v179_v14 = vsel %vm177_vm3, %v178_v9, %v174_v8 }
  0x61   : > { %vm180_vm4 = vcmp.eq.s32.totalorder %v179_v14, 0 }
  0x62   : > { %v185_v17 = vsel %vm180_vm4, %v183_v10, %v184_v11  ;;  %v190_v18 = vsel %vm180_vm4, %v188_v12, %v189_v13 }
  0x63   : > { %v193_v19 = vsub.f32 %v191_v15, %v185_v17  ;;  %v194_v20 = vsub.f32 %v192_v16, %v185_v17 }
  0x65   : > { %v195_v21 = vmul.f32 %v193_v19, %v190_v18  ;;  %v196_v22 = vmul.f32 %v194_v20, %v190_v18 }
  0x67   : > { %197 = vst [vmem:[%s160_s10] sm:$0xff] %v195_v21  ;;  %198 = vst [vmem:[%s160_s10 + $0x8] sm:$0xff] %v196_v22 }
  0x68   : > { %450 = shalt.err (!%p447_p0)
}
  0x69   : > { %s451_s16 = scalar_lea.hbm %s692_s7, 256  ;;  %s455_s20 = scalar_lea.hbm %s741_s3, 512 }
  0x6a   : > { %p452_p12 = scmp.ne.s32.totalorder %s692_s7, %s451_s16  ;;  %p456_p9 = scmp.lt.u32.totalorder %s692_s7, %s741_s3 }
  0x6b   : > { %p457_p10 = scmp.lt.u32.totalorder %s455_s20, %s451_s16  ;;  %p459_p2 = scmp.lt.u32.totalorder %s451_s16, %s692_s7 }
  0x6c   : > { %p453_p4 = pnand %p452_p12, %p751_p3 }
  0x6d   : > { %p458_p13 = por %p457_p10, %p456_p9 }
  0x6e   : > { %p454_p6 = pneg %p453_p4 }
  0x6f   : > { %p460_p5 = por %p459_p2, %p458_p13 }
  0x71   : > { %p461_p8 = pnand %p460_p5, %p454_p6 }
  0x73   : > { %464 = shalt.err (!%p461_p8)
}
  0x74   : > { %323 = dma.vmem_to_hbm [thread:$0]  (%p751_p3), %s687_s25, 256, %s692_s7, %s200_s8  }
  0x75 PF: > { %s228_s22 = sand.u32 1, %s501_s0   ;;  %p752_p1 = scmp.ne.s32.totalorder %s747_s13, 0 }
  0x76   : > { %p753_p7 = scmp.ge.s32.totalorder %s521_s30, 2  ;;  %s229_s23 = scalar_lea.sflag [#allocation7], %s228_s22 }
  0x78   : > { %p330_p11 = pnand %p753_p7, %p752_p1 }
  0x7a   : > { %496 = dma.done.wait (!%p330_p11), %s229_s23, 256  }
  0x7b   : > { %498 = vsyncadd (!%p330_p11), %s229_s23, 4294967040  ;;  %s27_s30 = sadd.s32 1, %s521_s30   ;;  %s754_s0 = smov %s505_s1 }
  0x7c   : > { %p24_p0 = scmp.ge.s32.totalorder %s27_s30, 4   ;;  %s755_s1 = smov %s509_s27 }
  0x7d   : > { %s756_s27 = smov %s618_s12  ;;  %s757_s28 = smov %s517_s29 }
  0x7e   : > { %s758_s29 = smov %s760_s6  ;;  %26 = sbr.rel (!%p24_p0) target bundleno = 28 (0x1c), region = 69 }
  0x85   :  { %234 = vsyncpa [#allocation6], 1 }
  0x86   :  { %236 = vsyncpa [#allocation6 + $0x1], 1 }
  0x87   :  { %237 = vsyncpa [#allocation7], 1 }
  0x88   :  { %239 = vsyncpa [#allocation7 + $0x1], 1 }

</bundles_post_ra>
